<compile_context>
chip_gen: v6e
topology: v6e:2x2x1
jax: 0.10.0
libtpu: 0.0.40
codegen_flags: <defaults>
</compile_context>

<pallas_src>
from typing import NamedTuple

import jax
import jax.numpy as jnp
from jax.experimental import pallas as pl
from jax.experimental.pallas import tpu as pltpu

_MiB = 1024 * 1024
_VMEM_BUDGET = 40 * _MiB          # target working set (fits 64 MiB v7x VMEM)
_VMEM_LIMIT = 48 * _MiB           # scoped VMEM limit handed to Mosaic
_WEIGHT_RESIDENT_BYTES = 12 * _MiB


def _cdiv(a, b):
    return (a + b - 1) // b


def _round_up(x, m):
    return _cdiv(x, m) * m


def _pick_tile(n, t_max, align):
    """Largest `align`-multiple tile <= t_max that minimizes padding of n."""
    n_al = _round_up(max(n, 1), align)
    t_cap = max((t_max // align) * align, align)
    if n_al <= t_cap:
        return n_al
    num = _cdiv(n, t_cap)
    return _round_up(_cdiv(n, num), align)


def _sublane(dtype):
    # NOTE: itemsize==1 (int8/fp8) operands would need explicit scale handling.
    return {4: 8, 2: 16, 1: 32}.get(jnp.dtype(dtype).itemsize, 8)


# ----------------------------- kernels ------------------------------------ #

def _linear_wres_kernel(x_ref, w_ref, b_ref, o_ref):
    """Weight-resident path: whole (Dp, Cp) weight is one VMEM block.

    x_ref: (tm, Dp)  w_ref: (Dp, Cp)  b_ref: (1, Cp) f32  o_ref: (tm, Cp)
    """
    acc = jnp.dot(x_ref[...], w_ref[...], preferred_element_type=jnp.float32)
    o_ref[...] = (acc + b_ref[...]).astype(o_ref.dtype)


def _linear_acc_kernel(x_ref, w_ref, b_ref, o_ref, acc_ref):
    """General path: K reduction over the last grid axis, f32 accumulator.

    x_ref: (tm, tk)  w_ref: (tk, tn)  b_ref: (1, tn) f32
    o_ref: (tm, tn)  acc_ref: (tm, tn) f32 scratch (persists across k).
    """
    k = pl.program_id(2)

    @pl.when(k == 0)
    def _():
        acc_ref[...] = jnp.zeros_like(acc_ref)

    acc_ref[...] += jnp.dot(x_ref[...], w_ref[...],
                            preferred_element_type=jnp.float32)

    @pl.when(k == pl.num_programs(2) - 1)
    def _():
        o_ref[...] = (acc_ref[...] + b_ref[...]).astype(o_ref.dtype)


# --------------------------- host-side wrappers ---------------------------- #

class PreparedLinear(NamedTuple):
    w_t: jax.Array        # (Dp, Cp) compute-dtype: transposed, cast, padded once
    bias2d: jax.Array     # (1, Cp) float32
    n_classes: int        # C
    latent: int           # D
    tn: int               # C tile
    tk: int               # D tile
    weight_resident: bool


def prepare_linear_params(weight, bias, *, compute_dtype=jnp.bfloat16,
                          tn_max=1024, tk_max=1024,
                          weight_resident_bytes=_WEIGHT_RESIDENT_BYTES):
    """One-time weight prep (hoist this out of the per-call path for inference).

    Transposes the PyTorch (C, D) weight to (D, C), casts to the compute dtype
    and zero-pads to tile multiples; picks the C/D tiles.
    """
    C, D = weight.shape
    assert bias.shape == (C,)
    cbytes = jnp.dtype(compute_dtype).itemsize

    cp_min = _round_up(C, 128)
    dp_min = _round_up(D, 128)

    weight_resident = (cp_min * dp_min * cbytes) <= weight_resident_bytes
    if weight_resident:
        tn, tk = cp_min, dp_min           # whole weight = one block, one DMA
    else:
        tn = _pick_tile(C, tn_max, 128)
        tk = _pick_tile(D, tk_max, 128)

    Cp = _round_up(C, tn)
    Dp = _round_up(D, tk)

    w_t = jnp.asarray(weight).T.astype(compute_dtype)        # (D, C) once
    if (Dp, Cp) != (D, C):
        w_t = jnp.pad(w_t, ((0, Dp - D), (0, Cp - C)))
    b2d = jnp.asarray(bias).astype(jnp.float32).reshape(1, C)
    if Cp != C:
        b2d = jnp.pad(b2d, ((0, 0), (0, Cp - C)))

    return PreparedLinear(w_t, b2d, C, D, tn, tk, weight_resident)


def linear_cap_apply(x, prep: PreparedLinear, *, tm_max=1024,
                     vmem_budget_bytes=_VMEM_BUDGET,
                     vmem_limit_bytes=_VMEM_LIMIT):
    """logits = x @ W.T + b using the prepared (pre-transposed) weights."""
    B, D = x.shape
    assert D == prep.latent, "latent size mismatch"
    out_dtype = x.dtype
    compute_dtype = prep.w_t.dtype
    cbytes = jnp.dtype(compute_dtype).itemsize
    obytes = jnp.dtype(out_dtype).itemsize

    tn, tk = prep.tn, prep.tk
    Dp, Cp = prep.w_t.shape
    C = prep.n_classes
    sub = max(_sublane(compute_dtype), _sublane(out_dtype))

    # VMEM budget: 2x x-tile + 2x weight-tile + 2x out-tile (+ f32 acc) <= budget.
    w_buf = 2 * tk * tn * cbytes
    per_row = (2 * tk * cbytes + 2 * tn * obytes
               + (0 if prep.weight_resident else tn * 4))
    tm_budget = max((vmem_budget_bytes - w_buf) // max(per_row, 1), sub)
    tm = _pick_tile(B, min(tm_max, tm_budget), sub)
    Bp = _round_up(B, tm)

    xp = x.astype(compute_dtype)
    if (Bp, Dp) != (B, D):
        xp = jnp.pad(xp, ((0, Bp - B), (0, Dp - D)))   # zero D-pad adds 0 to dot

    if prep.weight_resident:
        # Single resident weight block: 1-D grid over B, no K loop, no scratch.
        out = pl.pallas_call(
            _linear_wres_kernel,
            out_shape=jax.ShapeDtypeStruct((Bp, Cp), out_dtype),
            grid=(Bp // tm,),
            in_specs=[
                pl.BlockSpec((tm, Dp), lambda i: (i, 0)),    # x
                pl.BlockSpec((Dp, Cp), lambda i: (0, 0)),    # weight (resident)
                pl.BlockSpec((1, Cp), lambda i: (0, 0)),     # bias
            ],
            out_specs=pl.BlockSpec((tm, Cp), lambda i: (i, 0)),
            compiler_params=pltpu.CompilerParams(
                dimension_semantics=("parallel",),
                vmem_limit_bytes=vmem_limit_bytes,
            ),
        )(xp, prep.w_t, prep.bias2d)
    else:
        grid = (Bp // tm, Cp // tn, Dp // tk)
        out = pl.pallas_call(
            _linear_acc_kernel,
            out_shape=jax.ShapeDtypeStruct((Bp, Cp), out_dtype),
            grid=grid,
            in_specs=[
                pl.BlockSpec((tm, tk), lambda i, j, k: (i, k)),   # x
                pl.BlockSpec((tk, tn), lambda i, j, k: (k, j)),   # weight (D, C)
                pl.BlockSpec((1, tn), lambda i, j, k: (0, j)),    # bias
            ],
            out_specs=pl.BlockSpec((tm, tn), lambda i, j, k: (i, j)),
            scratch_shapes=[pltpu.VMEM((tm, tn), jnp.float32)],
            compiler_params=pltpu.CompilerParams(
                dimension_semantics=("parallel", "parallel", "arbitrary"),
                vmem_limit_bytes=vmem_limit_bytes,
            ),
        )(xp, prep.w_t, prep.bias2d)

    return out[:B, :C]


def categorical_classification_cap(x, weight, bias, *,
                                   compute_dtype=jnp.bfloat16,
                                   use_xla_for_tiny=True,
                                   tm_max=1024, tn_max=1024, tk_max=1024,
                                   weight_resident_bytes=_WEIGHT_RESIDENT_BYTES):
    """Forward pass of CategoricalClassificationCap (a single nn.Linear)."""
    B, D = x.shape
    C, D2 = weight.shape
    assert D2 == D and bias.shape == (C,)

    # Sub-tile problems: the pallas_call fixed cost (padding + per-step
    # overhead) dwarfs the math; let XLA fuse it upstream instead.
    if use_xla_for_tiny and B <= 256 and C <= 256 and D <= 512:
        return (x @ weight.T.astype(x.dtype) + bias.astype(x.dtype)).astype(x.dtype)

    prep = prepare_linear_params(weight, bias, compute_dtype=compute_dtype,
                                 tn_max=tn_max, tk_max=tk_max,
                                 weight_resident_bytes=weight_resident_bytes)
    return linear_cap_apply(x, prep, tm_max=tm_max)


# --------------------------------- demo ------------------------------------ #

if __name__ == "__main__":
    key = jax.random.PRNGKey(0)
    kx, kw, kb, kx2, kw2, kb2 = jax.random.split(key, 6)

    # --- module-scale shapes: latent_size=32, number_classes=16, batch=8 ---
    B, D, C = 8, 32, 16
    x = jax.random.normal(kx, (B, D), dtype=jnp.float32)
    weight = jax.random.normal(kw, (C, D), dtype=jnp.float32) * 0.05  # (C, D)
    bias = jax.random.normal(kb, (C,), dtype=jnp.float32) * 0.05
    ref = x @ weight.T + bias

    # Default wrapper: tiny case routes to the fused XLA fast path (exact).
    out = categorical_classification_cap(x, weight, bias)
    jax.block_until_ready(out)
    assert out.shape == (B, C)
    assert jnp.allclose(out, ref, atol=1e-5, rtol=1e-5)

    # Force the Pallas weight-resident kernel on the tiny case (f32 operands).
    prep_f32 = prepare_linear_params(weight, bias, compute_dtype=jnp.float32)
    assert prep_f32.weight_resident
    out_p = linear_cap_apply(x, prep_f32)
    jax.block_until_ready(out_p)
    assert out_p.shape == (B, C)
    assert jnp.allclose(out_p, ref, atol=1e-4, rtol=1e-4)

    # --- larger, unaligned shapes: tiling / padding / bf16 default path ---
    B2, D2, C2 = 300, 384, 1000
    x2 = jax.random.normal(kx2, (B2, D2), dtype=jnp.float32)
    w2 = jax.random.normal(kw2, (C2, D2), dtype=jnp.float32) * 0.05
    b2 = jax.random.normal(kb2, (C2,), dtype=jnp.float32) * 0.05
    ref2 = x2 @ w2.T + b2

    # bf16-operand, weight-resident Pallas path (default compute dtype).
    out2 = categorical_classification_cap(x2, w2, b2, use_xla_for_tiny=False)
    jax.block_until_ready(out2)
    assert out2.shape == (B2, C2)
    assert jnp.allclose(out2, ref2, atol=5e-2, rtol=5e-2)

    # General K-reduction kernel, forced by disallowing the resident weight.
    prep_gen = prepare_linear_params(w2, b2, compute_dtype=jnp.bfloat16,
                                     weight_resident_bytes=0,
                                     tn_max=512, tk_max=128)
    assert not prep_gen.weight_resident
    out3 = linear_cap_apply(x2, prep_gen, tm_max=256)
    jax.block_until_ready(out3)
    assert out3.shape == (B2, C2)
    assert jnp.allclose(out3, ref2, atol=5e-2, rtol=5e-2)

    # TODO(synk): loss() (CrossEntropyLoss) and acc() helpers are not part of
    # forward() and are not implemented here.
    print("KERNEL_OK")
</pallas_src>

<mosaic_0001>
module attributes {stable_mosaic.version = 11 : i64} {
  func.func @_linear_wres_kernel(%arg0: i32, %arg1: memref<8x128xf32, #tpu.memory_space<vmem>>, %arg2: memref<128x128xf32, #tpu.memory_space<vmem>>, %arg3: memref<1x128xf32, #tpu.memory_space<vmem>>, %arg4: memref<8x128xf32, #tpu.memory_space<vmem>>) attributes {dimension_semantics = [#tpu.dimension_semantics<parallel>], iteration_bounds = array<i64: 1>, scalar_prefetch = 0 : i64, scratch_operands = 0 : i64, tpu.core_type = #tpu.core_type<tc>, window_params = [{transform_indices = @transform_0, window_bounds = array<i64: 8, 128>}, {pipeline_mode = #tpu.pipeline_mode<synchronous>, transform_indices = @transform_1, window_bounds = array<i64: 128, 128>}, {pipeline_mode = #tpu.pipeline_mode<synchronous>, transform_indices = @transform_2, window_bounds = array<i64: 1, 128>}, {transform_indices = @transform_3, window_bounds = array<i64: 8, 128>}]} {
    %c0 = arith.constant 0 : index
    %c0_0 = arith.constant 0 : index
    %0 = vector.load %arg1[%c0, %c0_0] : memref<8x128xf32, #tpu.memory_space<vmem>>, vector<8x128xf32>
    %c0_1 = arith.constant 0 : index
    %c0_2 = arith.constant 0 : index
    %1 = vector.load %arg2[%c0_1, %c0_2] : memref<128x128xf32, #tpu.memory_space<vmem>>, vector<128x128xf32>
    %cst = arith.constant dense<0.000000e+00> : vector<8x128xf32>
    %2 = tpu.matmul %0, %1, %cst {dimension_numbers = #tpu.dot_dimension_numbers<[1], [0], [0], [1], [0, 0, 1, 1], [], []>} : vector<8x128xf32>, vector<128x128xf32>, vector<8x128xf32> -> vector<8x128xf32>
    %c0_3 = arith.constant 0 : index
    %c0_4 = arith.constant 0 : index
    %3 = vector.load %arg3[%c0_3, %c0_4] : memref<1x128xf32, #tpu.memory_space<vmem>>, vector<1x128xf32>
    %4 = vector.broadcast %3 : vector<1x128xf32> to vector<8x128xf32>
    %5 = arith.addf %2, %4 : vector<8x128xf32>
    %c0_5 = arith.constant 0 : index
    %c0_6 = arith.constant 0 : index
    %6 = vector.load %arg4[%c0_5, %c0_6] : memref<8x128xf32, #tpu.memory_space<vmem>>, vector<8x128xf32>
    tpu.vector_store %arg4[%c0_5, %c0_6], %5 {strides = array<i32>} : memref<8x128xf32, #tpu.memory_space<vmem>>, vector<8x128xf32>,
    return
  }
  func.func @transform_0(%arg0: i32) -> (i32, i32) {
    %c0_i32 = arith.constant 0 : i32
    %c0_i32_0 = arith.constant 0 : i32
    return %arg0, %c0_i32 : i32, i32
  }
  func.func @transform_1(%arg0: i32) -> (i32, i32) {
    %c0_i32 = arith.constant 0 : i32
    %c0_i32_0 = arith.constant 0 : i32
    %c0_i32_1 = arith.constant 0 : i32
    return %c0_i32, %c0_i32_0 : i32, i32
  }
  func.func @transform_2(%arg0: i32) -> (i32, i32) {
    %c0_i32 = arith.constant 0 : i32
    %c0_i32_0 = arith.constant 0 : i32
    %c0_i32_1 = arith.constant 0 : i32
    return %c0_i32, %c0_i32_0 : i32, i32
  }
  func.func @transform_3(%arg0: i32) -> (i32, i32) {
    %c0_i32 = arith.constant 0 : i32
    %c0_i32_0 = arith.constant 0 : i32
    return %arg0, %c0_i32 : i32, i32
  }
}

</mosaic_0001>

<bundles_post_ra>
// kernel: tpu_custom_call.1
= control target key start
LH: loop header
LB: loop body
LE: loop exit
PB: predicated region body
PF: predicated region fallthrough
CT: control target
= control target key end

     0   :  { %8 = vsyncpa [#allocation3], 0  ;;  %s317_s0 = inlined_call_operand.hbm [shape: f32[8,128], index: 0, kind: input, shape index: {}]   ;;  %s318_s1 = inlined_call_operand.hbm [shape: f32[128,128], index: 1, kind: input, shape index: {}]   ;;  %s319_s2 = inlined_call_operand.vmem [shape: f32[1,128], index: 2, kind: input, shape index: {}]   ;;  %s320_s3 = inlined_call_operand.hbm [shape: f32[8,128], index: 3, kind: output, shape index: {}]  }
   0x1   :  { %9 = vsyncpa [#allocation6], 0 }
   0x2   :  { %10 = vsyncpa [#allocation4], 0  ;;  %s278_s12 = smov [#allocation2]   ;;  %s279_s14 = smov [#allocation5]  }
   0x3   :  { %s17_s13 = sshll.u32 %s278_s12, 4  ;;  %s26_s15 = sshll.u32 %s279_s14, 4  ;;  %s18_s13 = int_to_ptr.vmem [resolvable:$true] %s17_s13  ;;  %s27_s15 = int_to_ptr.vmem [resolvable:$true] %s26_s15 }
   0x4   :  { %s220_s16 = scalar_lea.vmem %s18_s13, 128  ;;  %p225_p1 = scmp.lt.s32.totalorder %s18_s13, %s18_s13 }
   0x5   :  { %p221_p0 = scmp.ne.s32.totalorder %s18_s13, %s220_s16  ;;  %p226_p2 = scmp.lt.s32.totalorder %s220_s16, %s220_s16 }
   0x7   :  { %p227_p3 = por %p226_p2, %p225_p1 }
   0x9   :  { %p228_p4 = pnand %p227_p3, %p221_p0 }
   0xb   :  { %231 = shalt.err (!%p228_p4)
}
   0xc   :  { %20 = dma.hbm_to_vmem [thread:$0]  %s317_s0, 128, %s18_s13, [#allocation3]  }
   0xd   :  { %s240_s19 = scalar_lea.vmem %s27_s15, 2048  ;;  %p245_p6 = scmp.lt.s32.totalorder %s27_s15, %s27_s15 }
   0xe   :  { %p241_p5 = scmp.ne.s32.totalorder %s27_s15, %s240_s19  ;;  %p246_p7 = scmp.lt.s32.totalorder %s240_s19, %s240_s19 }
  0x10   :  { %p247_p8 = por %p246_p7, %p245_p6 }
  0x12   :  { %p248_p9 = pnand %p247_p8, %p241_p5 }
  0x14   :  { %251 = shalt.err (!%p248_p9)
}
  0x15   :  { %s280_s20 = smov 128   ;;  %s281_s21 = smov 8  }
  0x16   :  { %32 = dma.hbm_to_vmem [thread:$0]  %s318_s1, 2048, %s27_s15, [#allocation6], %s280_s20, %s280_s20, %s281_s21  }
  0x17   :  { %272 = dma.done.wait [#allocation3], 128  }
  0x18   :  { %273 = vsyncadd [#allocation3], 4294967168 }
  0x19   :  { %274 = dma.done.wait [#allocation6], 2048  }
  0x1a   :  { %275 = vsyncadd [#allocation6], 4294965248  ;;  %v282_v0 = vmov 0.0   ;;  %vm283_vm0 = vmmov 0   ;;  %v57_v1 = vld [vmem:[#allocation5 + $0x78] sm:$0xff]  ;;  %v56_v2 = vld [vmem:[#allocation5 + $0x70] sm:$0xff] }
  0x1b   :  { %170 = vmatprep.subr.mxu0 %v282_v0  ;;  %202 = vmatprep.mubr.msk.f32.mxu0 %vm283_vm0, %v282_v0  ;;  %v55_v3 = vld [vmem:[#allocation5 + $0x68] sm:$0xff]  ;;  %v54_v4 = vld [vmem:[#allocation5 + $0x60] sm:$0xff]  ;;  %v53_v5 = vld [vmem:[#allocation5 + $0x58] sm:$0xff]  ;;  %s284_s24 = smov [#allocation7]  }
  0x1c   :  { %171 = vmatpush3.msra.mxu0 %v57_v1  ;;  %v52_v6 = vld [vmem:[#allocation5 + $0x50] sm:$0xff]  ;;  %v51_v7 = vld [vmem:[#allocation5 + $0x48] sm:$0xff]  ;;  %v50_v8 = vld [vmem:[#allocation5 + $0x40] sm:$0xff]  ;;  %s142_s25 = sshll.u32 %s284_s24, 4  ;;  %s143_s25 = int_to_ptr.vmem [resolvable:$true] %s142_s25 }
  0x1d   :  { %172 = vmatprep.subr.mxu0 %v282_v0  ;;  %v49_v9 = vld [vmem:[#allocation5 + $0x38] sm:$0xff]  ;;  %v48_v10 = vld [vmem:[#allocation5 + $0x30] sm:$0xff]  ;;  %v47_v11 = vld [vmem:[#allocation5 + $0x28] sm:$0xff]  ;;  %s252_s26 = scalar_lea.vmem %s143_s25, 128  ;;  %p257_p11 = scmp.lt.s32.totalorder %s143_s25, %s143_s25 }
  0x1e   :  { %173 = vmatpush3.msra.mxu0 %v56_v2  ;;  %v46_v12 = vld [vmem:[#allocation5 + $0x20] sm:$0xff]  ;;  %v45_v13 = vld [vmem:[#allocation5 + $0x18] sm:$0xff]  ;;  %v44_v14 = vld [vmem:[#allocation5 + $0x10] sm:$0xff]  ;;  %p253_p10 = scmp.ne.s32.totalorder %s143_s25, %s252_s26  ;;  %p258_p12 = scmp.lt.s32.totalorder %s252_s26, %s252_s26 }
  0x1f   :  { %174 = vmatprep.subr.mxu0 %v282_v0  ;;  %v43_v15 = vld [vmem:[#allocation5 + $0x8] sm:$0xff]  ;;  %v42_v16 = vld [vmem:[#allocation5] sm:$0xff]  ;;  %v41_v17 = vld [vmem:[#allocation2] sm:$0xff] }
  0x20   :  { %175 = vmatpush3.msra.mxu0 %v55_v3  ;;  %v152_v18 = vld [vmem:[%s319_s2] ss:$0 sm:$0xff]  ;;  %p259_p13 = por %p258_p12, %p257_p11 }
  0x21   :  { %176 = vmatprep.subr.mxu0 %v282_v0 }
  0x22   :  { %177 = vmatpush3.msra.mxu0 %v54_v4  ;;  %p260_p0 = pnand %p259_p13, %p253_p10 }
  0x23   :  { %178 = vmatprep.subr.mxu0 %v282_v0 }
  0x24   :  { %179 = vmatpush3.msra.mxu0 %v53_v5 }
  0x25   :  { %180 = vmatprep.subr.mxu0 %v282_v0 }
  0x26   :  { %181 = vmatpush3.msra.mxu0 %v52_v6 }
  0x27   :  { %182 = vmatprep.subr.mxu0 %v282_v0 }
  0x28   :  { %183 = vmatpush3.msra.mxu0 %v51_v7 }
  0x29   :  { %184 = vmatprep.subr.mxu0 %v282_v0 }
  0x2a   :  { %185 = vmatpush3.msra.mxu0 %v50_v8 }
  0x2b   :  { %186 = vmatprep.subr.mxu0 %v282_v0 }
  0x2c   :  { %187 = vmatpush3.msra.mxu0 %v49_v9 }
  0x2d   :  { %188 = vmatprep.subr.mxu0 %v282_v0 }
  0x2e   :  { %189 = vmatpush3.msra.mxu0 %v48_v10 }
  0x2f   :  { %190 = vmatprep.subr.mxu0 %v282_v0 }
  0x30   :  { %191 = vmatpush3.msra.mxu0 %v47_v11 }
  0x31   :  { %192 = vmatprep.subr.mxu0 %v282_v0 }
  0x32   :  { %193 = vmatpush3.msra.mxu0 %v46_v12 }
  0x33   :  { %194 = vmatprep.subr.mxu0 %v282_v0 }
  0x34   :  { %195 = vmatpush3.msra.mxu0 %v45_v13 }
  0x35   :  { %196 = vmatprep.subr.mxu0 %v282_v0 }
  0x36   :  { %197 = vmatpush3.msra.mxu0 %v44_v14 }
  0x37   :  { %198 = vmatprep.subr.mxu0 %v282_v0 }
  0x38   :  { %199 = vmatpush3.msra.mxu0 %v43_v15 }
  0x39   :  { %200 = vmatprep.subr.mxu0 %v282_v0 }
  0x3a   :  { %201 = vmatpush3.msra.mxu0 %v42_v16 }
  0x3b   :  { %203 = vmatmul.mubr.f32.vlgmr.msra.gmra.mxu0 %v41_v17 }
  0xfb   :  { %v131_v19 = vpop.f32.mrf.mxu0 }
  0xfc   :  { %v132_v20 = vadd.f32 %v152_v18, %v131_v19 }
  0xfd   :  { %v204_v21 = vpop.f32.mrf.mxu0 }
  0xfe   :  { %135 = vst [vmem:[#allocation7] sm:$0xff] %v132_v20 }
  0xff   :  { %263 = shalt.err (!%p260_p0)
}
 0x100   :  { %145 = dma.vmem_to_hbm [thread:$0]  %s143_s25, 128, %s320_s3, [#allocation4]  }
 0x101   :  { %276 = dma.done.wait [#allocation4], 128  }
 0x102   :  { %277 = vsyncadd [#allocation4], 4294967168 }
 0x103   :  { %149 = vsyncpa [#allocation3], 1 }
 0x104   :  { %150 = vsyncpa [#allocation6], 1 }
 0x105   :  { %151 = vsyncpa [#allocation4], 1 }

</bundles_post_ra>
